<compile_context>
chip_gen: v6e
topology: v6e:2x2x1
jax: 0.10.0
libtpu: 0.0.40
codegen_flags: <defaults>
</compile_context>

<pallas_src>
import math
import functools

import jax
import jax.numpy as jnp
from jax.experimental import pallas as pl
from jax.experimental.pallas import tpu as pltpu


def _layernorm(x, gamma, beta, eps=1e-5):
    mu = jnp.mean(x, axis=-1, keepdims=True)
    xc = x - mu                                   # reuse (x - mu): one VALU pass saved
    var = jnp.mean(xc * xc, axis=-1, keepdims=True)
    return xc * jax.lax.rsqrt(var + eps) * gamma + beta


def encoder_layer_kernel(
    src_ref,
    wqh_ref, wkh_ref, wvh_ref, bqh_ref, bkh_ref, bvh_ref,
    woh_ref, bo_ref,
    g1_ref, be1_ref,
    w1_ref, b1_ref, w2_ref, b2_ref,
    g2_ref, be2_ref,
    out_ref,
    *, num_heads, d_k,
):
    H, dk = num_heads, d_k

    x = src_ref[0].astype(jnp.float32)            # [S, D] residual path, f32
    xb = x.astype(jnp.bfloat16)                   # bf16 MXU operand

    # --- QKV projections, head-major output [H, S, dk] (head split fused) ---
    xh = jnp.broadcast_to(xb, (H,) + xb.shape)    # [H, S, D]
    # TODO(synk): for large H*S*D replace this broadcast by a 3D(w) x 2D(x)
    #             dot_general if/when Mosaic supports those dimension numbers.

    def proj(w_ref, b_ref):
        y = jnp.einsum("hsd,hdk->hsk", xh, w_ref[...],
                       preferred_element_type=jnp.float32)      # [H, S, dk] f32
        return y + b_ref[...]                                   # bias [H, 1, dk]

    scale = 1.0 / math.sqrt(dk)
    qh = (proj(wqh_ref, bqh_ref) * scale).astype(jnp.bfloat16)
    kh = proj(wkh_ref, bkh_ref).astype(jnp.bfloat16)
    vh = proj(wvh_ref, bvh_ref).astype(jnp.bfloat16)

    # --- attention (src_mask=None path), softmax statistics in f32 ---
    # TODO(synk): src_mask path (masked_fill with -inf) not wired; the forward
    #             default src_mask=None is implemented.
    # TODO(synk): for long sequences add a KV grid axis with flash-style online
    #             softmax so scores stay [H, Sq_tile, Skv_tile] in VMEM.
    scores = jnp.einsum("hqd,hkd->hqk", qh, kh,
                        preferred_element_type=jnp.float32)     # [H, S, S]
    scores = scores - jnp.max(scores, axis=-1, keepdims=True)
    p = jnp.exp(scores)
    p = p / jnp.sum(p, axis=-1, keepdims=True)

    ctx = jnp.einsum("hqk,hkd->hqd", p.astype(jnp.bfloat16), vh,
                     preferred_element_type=jnp.float32)        # [H, S, dk]

    # --- output projection with head merge fused: sum_h ctx[h] @ Wo[h] ---
    proj_o = jnp.einsum("hsd,hdm->hsm", ctx.astype(jnp.bfloat16), woh_ref[...],
                        preferred_element_type=jnp.float32)     # [H, S, D]
    attn_out = jnp.sum(proj_o, axis=0) + bo_ref[...]            # [S, D]

    # --- residual + LayerNorm 1 (dropout is identity at inference) ---
    x1 = _layernorm(x + attn_out, g1_ref[...], be1_ref[...])

    # --- FeedForward: linear2(relu(linear1(x1))) ---
    hdn = jnp.dot(x1.astype(jnp.bfloat16), w1_ref[...],
                  preferred_element_type=jnp.float32) + b1_ref[...]
    hdn = jnp.maximum(hdn, 0.0)
    ff = jnp.dot(hdn.astype(jnp.bfloat16), w2_ref[...],
                 preferred_element_type=jnp.float32) + b2_ref[...]

    # --- residual + LayerNorm 2 ---
    x2 = _layernorm(x1 + ff, g2_ref[...], be2_ref[...])
    out_ref[0] = x2.astype(out_ref.dtype)


def encoder_layer(src, params, *, num_heads, param_dtype=jnp.bfloat16):
    B, S, D = src.shape
    assert D % num_heads == 0, "d_model must be divisible by num_heads"
    H = num_heads
    dk = D // H
    dff = params["w1"].shape[1]
    f32 = jnp.float32
    wd = param_dtype

    # One-time (outside-kernel) weight relayout so head split/merge is fused into
    # the projection matmuls; weights stored/streamed as bf16, biases/LN in f32.
    wqh = params["wq"].reshape(D, H, dk).transpose(1, 0, 2).astype(wd)   # [H, D, dk]
    wkh = params["wk"].reshape(D, H, dk).transpose(1, 0, 2).astype(wd)
    wvh = params["wv"].reshape(D, H, dk).transpose(1, 0, 2).astype(wd)
    woh = params["wo"].reshape(H, dk, D).astype(wd)                      # [H, dk, D]
    bqh = params["bq"].reshape(H, 1, dk).astype(f32)
    bkh = params["bk"].reshape(H, 1, dk).astype(f32)
    bvh = params["bv"].reshape(H, 1, dk).astype(f32)
    bo = params["bo"].astype(f32)
    w1 = params["w1"].astype(wd)
    b1 = params["b1"].astype(f32)
    w2 = params["w2"].astype(wd)
    b2 = params["b2"].astype(f32)
    g1, be1 = params["g1"].astype(f32), params["be1"].astype(f32)
    g2, be2 = params["g2"].astype(f32), params["be2"].astype(f32)

    # One batch element per grid step: pipelines src/out DMA against compute and
    # gives the megacore a >=2-step parallel axis on v7x.
    grid = (B,)
    # TODO(synk): for long S, add a query-row tile axis (flash-style) so the
    #             per-step slab stays bounded; for d_model / dff < 128 pad to
    #             lane-dense multiples of 128 before committing to this layout.

    def const_spec(shape):
        nd = len(shape)
        # Grid-invariant block: single-buffer it (no 2x resident weight VMEM).
        return pl.BlockSpec(shape, lambda b: (0,) * nd,
                            pipeline_mode=pl.Buffered(1))

    in_specs = [
        pl.BlockSpec((1, S, D), lambda b: (b, 0, 0)),                    # src
        const_spec((H, D, dk)), const_spec((H, D, dk)), const_spec((H, D, dk)),
        const_spec((H, 1, dk)), const_spec((H, 1, dk)), const_spec((H, 1, dk)),
        const_spec((H, dk, D)), const_spec((1, D)),
        const_spec((1, D)), const_spec((1, D)),
        const_spec((D, dff)), const_spec((1, dff)),
        const_spec((dff, D)), const_spec((1, D)),
        const_spec((1, D)), const_spec((1, D)),
    ]
    out_specs = pl.BlockSpec((1, S, D), lambda b: (b, 0, 0))

    # Cost estimate (projections + attention + FFN) for XLA scheduling.
    wbytes = (wqh.size + wkh.size + wvh.size + woh.size + w1.size + w2.size) \
        * jnp.dtype(wd).itemsize
    bbytes = 4 * (bqh.size + bkh.size + bvh.size + bo.size + b1.size + b2.size
                  + g1.size + be1.size + g2.size + be2.size)
    io_bytes = 2 * src.size * src.dtype.itemsize
    flops = (2 * B * S * D * D * 4          # Q/K/V/out projections
             + 2 * B * H * S * S * dk * 2   # scores + PV
             + 2 * B * S * D * dff * 2)     # FFN
    cost = pl.CostEstimate(flops=flops, transcendentals=B * H * S * S,
                           bytes_accessed=io_bytes + wbytes + bbytes)

    # VMEM budget: single-buffered weights + double-buffered (src, out) tiles +
    # f32 activation working set, with 2x headroom, capped well under v7x's 64MiB
    # physical VMEM for these shapes.
    act_bytes = 4 * (2 * H * S * D + 3 * H * S * dk + 2 * H * S * S
                     + S * dff + 6 * S * D)
    tile_bytes = 2 * 2 * S * D * src.dtype.itemsize
    vmem_limit = int(min(100 * (1 << 20),
                         max(16 * (1 << 20),
                             2 * (wbytes + bbytes + tile_bytes + act_bytes))))

    out = pl.pallas_call(
        functools.partial(encoder_layer_kernel, num_heads=H, d_k=dk),
        out_shape=jax.ShapeDtypeStruct((B, S, D), src.dtype),
        grid_spec=pltpu.PrefetchScalarGridSpec(
            num_scalar_prefetch=0,
            grid=grid,
            in_specs=in_specs,
            out_specs=out_specs,
        ),
        compiler_params=pltpu.CompilerParams(
            dimension_semantics=("parallel",),
            vmem_limit_bytes=vmem_limit,
        ),
        cost_estimate=cost,
    )(src, wqh, wkh, wvh, bqh, bkh, bvh, woh, bo,
      g1, be1, w1, b1, w2, b2, g2, be2)
    return out


def encoder_layer_reference(src, params, *, num_heads):
    """Pure-JAX f32 reference mirroring the PyTorch forward (eval mode)."""
    B, S, D = src.shape
    d_k = D // num_heads
    x = src
    q = x @ params["wq"] + params["bq"][0]
    k = x @ params["wk"] + params["bk"][0]
    v = x @ params["wv"] + params["bv"][0]
    q = q.reshape(B, S, num_heads, d_k).transpose(0, 2, 1, 3)
    k = k.reshape(B, S, num_heads, d_k).transpose(0, 2, 1, 3)
    v = v.reshape(B, S, num_heads, d_k).transpose(0, 2, 1, 3)
    scores = jnp.einsum("bhqd,bhkd->bhqk", q, k) / math.sqrt(d_k)
    attn = jax.nn.softmax(scores, axis=-1)
    ctx = jnp.einsum("bhqk,bhkd->bhqd", attn, v).transpose(0, 2, 1, 3).reshape(B, S, D)
    attn_out = ctx @ params["wo"] + params["bo"][0]

    def ln(y, g, b):
        mu = jnp.mean(y, -1, keepdims=True)
        var = jnp.mean((y - mu) ** 2, -1, keepdims=True)
        return (y - mu) * jax.lax.rsqrt(var + 1e-5) * g[0] + b[0]

    x1 = ln(x + attn_out, params["g1"], params["be1"])
    hdn = jnp.maximum(x1 @ params["w1"] + params["b1"][0], 0.0)
    ff = hdn @ params["w2"] + params["b2"][0]
    return ln(x1 + ff, params["g2"], params["be2"])


def make_params(key, d_model, num_heads, dim_feedforward):
    ks = jax.random.split(key, 12)
    s = 0.05
    return {
        "wq": jax.random.normal(ks[0], (d_model, d_model), jnp.float32) * s,
        "bq": jax.random.normal(ks[1], (1, d_model), jnp.float32) * s,
        "wk": jax.random.normal(ks[2], (d_model, d_model), jnp.float32) * s,
        "bk": jax.random.normal(ks[3], (1, d_model), jnp.float32) * s,
        "wv": jax.random.normal(ks[4], (d_model, d_model), jnp.float32) * s,
        "bv": jax.random.normal(ks[5], (1, d_model), jnp.float32) * s,
        "wo": jax.random.normal(ks[6], (d_model, d_model), jnp.float32) * s,
        "bo": jax.random.normal(ks[7], (1, d_model), jnp.float32) * s,
        "g1": jnp.ones((1, d_model), jnp.float32),
        "be1": jnp.zeros((1, d_model), jnp.float32),
        "w1": jax.random.normal(ks[8], (d_model, dim_feedforward), jnp.float32) * s,
        "b1": jax.random.normal(ks[9], (1, dim_feedforward), jnp.float32) * s,
        "w2": jax.random.normal(ks[10], (dim_feedforward, d_model), jnp.float32) * s,
        "b2": jax.random.normal(ks[11], (1, d_model), jnp.float32) * s,
        "g2": jnp.ones((1, d_model), jnp.float32),
        "be2": jnp.zeros((1, d_model), jnp.float32),
    }


if __name__ == "__main__":
    B, S, d_model, num_heads, dim_feedforward = 2, 8, 32, 4, 64

    key = jax.random.PRNGKey(0)
    k_src, k_par = jax.random.split(key)
    src = jax.random.normal(k_src, (B, S, d_model), jnp.float32)
    params = make_params(k_par, d_model, num_heads, dim_feedforward)

    out = encoder_layer(src, params, num_heads=num_heads)
    out = jax.block_until_ready(out)

    ref = encoder_layer_reference(src, params, num_heads=num_heads)
    assert out.shape == (B, S, d_model)
    assert out.dtype == src.dtype
    # Tolerance accounts for bf16 MXU operands (weights + staged activations)
    # with f32 accumulation; LayerNorm / softmax statistics remain in f32.
    err = float(jnp.max(jnp.abs(out - ref)))
    assert jnp.allclose(out, ref, atol=3e-2, rtol=3e-2), (
        f"mismatch vs pure-JAX reference (max abs err = {err})")
    print("KERNEL_OK")
</pallas_src>

<mosaic_0001>
module attributes {stable_mosaic.version = 11 : i64} {
  func.func @encoder_layer_kernel(%arg0: i32, %arg1: memref<1x8x32xf32, #tpu.memory_space<vmem>>, %arg2: memref<4x32x8xbf16, #tpu.memory_space<vmem>>, %arg3: memref<4x32x8xbf16, #tpu.memory_space<vmem>>, %arg4: memref<4x32x8xbf16, #tpu.memory_space<vmem>>, %arg5: memref<4x1x8xf32, #tpu.memory_space<vmem>>, %arg6: memref<4x1x8xf32, #tpu.memory_space<vmem>>, %arg7: memref<4x1x8xf32, #tpu.memory_space<vmem>>, %arg8: memref<4x8x32xbf16, #tpu.memory_space<vmem>>, %arg9: memref<1x32xf32, #tpu.memory_space<vmem>>, %arg10: memref<1x32xf32, #tpu.memory_space<vmem>>, %arg11: memref<1x32xf32, #tpu.memory_space<vmem>>, %arg12: memref<32x64xbf16, #tpu.memory_space<vmem>>, %arg13: memref<1x64xf32, #tpu.memory_space<vmem>>, %arg14: memref<64x32xbf16, #tpu.memory_space<vmem>>, %arg15: memref<1x32xf32, #tpu.memory_space<vmem>>, %arg16: memref<1x32xf32, #tpu.memory_space<vmem>>, %arg17: memref<1x32xf32, #tpu.memory_space<vmem>>, %arg18: memref<1x8x32xf32, #tpu.memory_space<vmem>>) attributes {dimension_semantics = [#tpu.dimension_semantics<parallel>], iteration_bounds = array<i64: 2>, scalar_prefetch = 0 : i64, scratch_operands = 0 : i64, tpu.core_type = #tpu.core_type<tc>, window_params = [{transform_indices = @transform_0, window_bounds = array<i64: 1, 8, 32>}, {pipeline_mode = #tpu.pipeline_mode<synchronous>, transform_indices = @transform_1, window_bounds = array<i64: 4, 32, 8>}, {pipeline_mode = #tpu.pipeline_mode<synchronous>, transform_indices = @transform_2, window_bounds = array<i64: 4, 32, 8>}, {pipeline_mode = #tpu.pipeline_mode<synchronous>, transform_indices = @transform_3, window_bounds = array<i64: 4, 32, 8>}, {pipeline_mode = #tpu.pipeline_mode<synchronous>, transform_indices = @transform_4, window_bounds = array<i64: 4, 1, 8>}, {pipeline_mode = #tpu.pipeline_mode<synchronous>, transform_indices = @transform_5, window_bounds = array<i64: 4, 1, 8>}, {pipeline_mode = #tpu.pipeline_mode<synchronous>, transform_indices = @transform_6, window_bounds = array<i64: 4, 1, 8>}, {pipeline_mode = #tpu.pipeline_mode<synchronous>, transform_indices = @transform_7, window_bounds = array<i64: 4, 8, 32>}, {pipeline_mode = #tpu.pipeline_mode<synchronous>, transform_indices = @transform_8, window_bounds = array<i64: 1, 32>}, {pipeline_mode = #tpu.pipeline_mode<synchronous>, transform_indices = @transform_9, window_bounds = array<i64: 1, 32>}, {pipeline_mode = #tpu.pipeline_mode<synchronous>, transform_indices = @transform_10, window_bounds = array<i64: 1, 32>}, {pipeline_mode = #tpu.pipeline_mode<synchronous>, transform_indices = @transform_11, window_bounds = array<i64: 32, 64>}, {pipeline_mode = #tpu.pipeline_mode<synchronous>, transform_indices = @transform_12, window_bounds = array<i64: 1, 64>}, {pipeline_mode = #tpu.pipeline_mode<synchronous>, transform_indices = @transform_13, window_bounds = array<i64: 64, 32>}, {pipeline_mode = #tpu.pipeline_mode<synchronous>, transform_indices = @transform_14, window_bounds = array<i64: 1, 32>}, {pipeline_mode = #tpu.pipeline_mode<synchronous>, transform_indices = @transform_15, window_bounds = array<i64: 1, 32>}, {pipeline_mode = #tpu.pipeline_mode<synchronous>, transform_indices = @transform_16, window_bounds = array<i64: 1, 32>}, {transform_indices = @transform_17, window_bounds = array<i64: 1, 8, 32>}]} {
    %c0 = arith.constant 0 : index
    %c0_0 = arith.constant 0 : index
    %c0_1 = arith.constant 0 : index
    %0 = vector.load %arg1[%c0, %c0_0, %c0_1] : memref<1x8x32xf32, #tpu.memory_space<vmem>>, vector<1x8x32xf32>
    %1 = vector.shape_cast %0 : vector<1x8x32xf32> to vector<8x32xf32>
    %2 = arith.truncf %1 : vector<8x32xf32> to vector<8x32xbf16>
    %3 = vector.shape_cast %2 : vector<8x32xbf16> to vector<1x8x32xbf16>
    %4 = vector.broadcast %3 : vector<1x8x32xbf16> to vector<4x8x32xbf16>
    %c0_2 = arith.constant 0 : index
    %c0_3 = arith.constant 0 : index
    %c0_4 = arith.constant 0 : index
    %5 = vector.load %arg2[%c0_2, %c0_3, %c0_4] : memref<4x32x8xbf16, #tpu.memory_space<vmem>>, vector<4x32x8xbf16>
    "tpu.trace_start"() <{level = 10 : i32, message = "hsd,hdk->hsk"}> : () -> ()
    %cst = arith.constant dense<0.000000e+00> : vector<4x8x8xf32>
    %6 = tpu.matmul %4, %5, %cst {dimension_numbers = #tpu.dot_dimension_numbers<[2], [1], [1], [2], [0, 0, 0, 1, 1, 2], [0], [0]>} : vector<4x8x32xbf16>, vector<4x32x8xbf16>, vector<4x8x8xf32> -> vector<4x8x8xf32>
    "tpu.trace_stop"() : () -> ()
    %c0_5 = arith.constant 0 : index
    %c0_6 = arith.constant 0 : index
    %c0_7 = arith.constant 0 : index
    %7 = vector.load %arg5[%c0_5, %c0_6, %c0_7] : memref<4x1x8xf32, #tpu.memory_space<vmem>>, vector<4x1x8xf32>
    %8 = vector.broadcast %7 : vector<4x1x8xf32> to vector<4x8x8xf32>
    %9 = arith.addf %6, %8 : vector<4x8x8xf32>
    %cst_8 = arith.constant 0.353553385 : f32
    %10 = vector.broadcast %cst_8 : f32 to vector<4x8x8xf32>
    %11 = arith.mulf %9, %10 : vector<4x8x8xf32>
    %12 = arith.truncf %11 : vector<4x8x8xf32> to vector<4x8x8xbf16>
    %c0_9 = arith.constant 0 : index
    %c0_10 = arith.constant 0 : index
    %c0_11 = arith.constant 0 : index
    %13 = vector.load %arg3[%c0_9, %c0_10, %c0_11] : memref<4x32x8xbf16, #tpu.memory_space<vmem>>, vector<4x32x8xbf16>
    "tpu.trace_start"() <{level = 10 : i32, message = "hsd,hdk->hsk"}> : () -> ()
    %cst_12 = arith.constant dense<0.000000e+00> : vector<4x8x8xf32>
    %14 = tpu.matmul %4, %13, %cst_12 {dimension_numbers = #tpu.dot_dimension_numbers<[2], [1], [1], [2], [0, 0, 0, 1, 1, 2], [0], [0]>} : vector<4x8x32xbf16>, vector<4x32x8xbf16>, vector<4x8x8xf32> -> vector<4x8x8xf32>
    "tpu.trace_stop"() : () -> ()
    %c0_13 = arith.constant 0 : index
    %c0_14 = arith.constant 0 : index
    %c0_15 = arith.constant 0 : index
    %15 = vector.load %arg6[%c0_13, %c0_14, %c0_15] : memref<4x1x8xf32, #tpu.memory_space<vmem>>, vector<4x1x8xf32>
    %16 = vector.broadcast %15 : vector<4x1x8xf32> to vector<4x8x8xf32>
    %17 = arith.addf %14, %16 : vector<4x8x8xf32>
    %18 = arith.truncf %17 : vector<4x8x8xf32> to vector<4x8x8xbf16>
    %c0_16 = arith.constant 0 : index
    %c0_17 = arith.constant 0 : index
    %c0_18 = arith.constant 0 : index
    %19 = vector.load %arg4[%c0_16, %c0_17, %c0_18] : memref<4x32x8xbf16, #tpu.memory_space<vmem>>, vector<4x32x8xbf16>
    "tpu.trace_start"() <{level = 10 : i32, message = "hsd,hdk->hsk"}> : () -> ()
    %cst_19 = arith.constant dense<0.000000e+00> : vector<4x8x8xf32>
    %20 = tpu.matmul %4, %19, %cst_19 {dimension_numbers = #tpu.dot_dimension_numbers<[2], [1], [1], [2], [0, 0, 0, 1, 1, 2], [0], [0]>} : vector<4x8x32xbf16>, vector<4x32x8xbf16>, vector<4x8x8xf32> -> vector<4x8x8xf32>
    "tpu.trace_stop"() : () -> ()
    %c0_20 = arith.constant 0 : index
    %c0_21 = arith.constant 0 : index
    %c0_22 = arith.constant 0 : index
    %21 = vector.load %arg7[%c0_20, %c0_21, %c0_22] : memref<4x1x8xf32, #tpu.memory_space<vmem>>, vector<4x1x8xf32>
    %22 = vector.broadcast %21 : vector<4x1x8xf32> to vector<4x8x8xf32>
    %23 = arith.addf %20, %22 : vector<4x8x8xf32>
    %24 = arith.truncf %23 : vector<4x8x8xf32> to vector<4x8x8xbf16>
    "tpu.trace_start"() <{level = 10 : i32, message = "hqd,hkd->hqk"}> : () -> ()
    %cst_23 = arith.constant dense<0.000000e+00> : vector<4x8x8xf32>
    %25 = tpu.matmul %12, %18, %cst_23 {dimension_numbers = #tpu.dot_dimension_numbers<[2], [2], [1], [1], [0, 0, 0, 1, 1, 1], [0], [0]>} : vector<4x8x8xbf16>, vector<4x8x8xbf16>, vector<4x8x8xf32> -> vector<4x8x8xf32>
    "tpu.trace_stop"() : () -> ()
    %cst_24 = arith.constant dense<0xFF800000> : vector<4x8xf32>
    %26 = vector.multi_reduction <maximumf>, %25, %cst_24 [2] : vector<4x8x8xf32> to vector<4x8xf32>
    %27 = vector.shape_cast %26 : vector<4x8xf32> to vector<4x8x1xf32>
    %28 = vector.broadcast %27 : vector<4x8x1xf32> to vector<4x8x8xf32>
    %29 = arith.subf %25, %28 : vector<4x8x8xf32>
    %30 = math.exp %29 : vector<4x8x8xf32>
    %cst_25 = arith.constant dense<0.000000e+00> : vector<4x8xf32>
    %31 = vector.multi_reduction <add>, %30, %cst_25 [2] : vector<4x8x8xf32> to vector<4x8xf32>
    %32 = vector.shape_cast %31 : vector<4x8xf32> to vector<4x8x1xf32>
    %33 = vector.broadcast %32 : vector<4x8x1xf32> to vector<4x8x8xf32>
    %34 = arith.divf %30, %33 : vector<4x8x8xf32>
    %35 = arith.truncf %34 : vector<4x8x8xf32> to vector<4x8x8xbf16>
    "tpu.trace_start"() <{level = 10 : i32, message = "hqk,hkd->hqd"}> : () -> ()
    %cst_26 = arith.constant dense<0.000000e+00> : vector<4x8x8xf32>
    %36 = tpu.matmul %35, %24, %cst_26 {dimension_numbers = #tpu.dot_dimension_numbers<[2], [1], [1], [2], [0, 0, 0, 1, 1, 2], [0], [0]>} : vector<4x8x8xbf16>, vector<4x8x8xbf16>, vector<4x8x8xf32> -> vector<4x8x8xf32>
    "tpu.trace_stop"() : () -> ()
    %37 = arith.truncf %36 : vector<4x8x8xf32> to vector<4x8x8xbf16>
    %c0_27 = arith.constant 0 : index
    %c0_28 = arith.constant 0 : index
    %c0_29 = arith.constant 0 : index
    %38 = vector.load %arg8[%c0_27, %c0_28, %c0_29] : memref<4x8x32xbf16, #tpu.memory_space<vmem>>, vector<4x8x32xbf16>
    "tpu.trace_start"() <{level = 10 : i32, message = "hsd,hdm->hsm"}> : () -> ()
    %cst_30 = arith.constant dense<0.000000e+00> : vector<4x8x32xf32>
    %39 = tpu.matmul %37, %38, %cst_30 {dimension_numbers = #tpu.dot_dimension_numbers<[2], [1], [1], [2], [0, 0, 0, 1, 1, 2], [0], [0]>} : vector<4x8x8xbf16>, vector<4x8x32xbf16>, vector<4x8x32xf32> -> vector<4x8x32xf32>
    "tpu.trace_stop"() : () -> ()
    %cst_31 = arith.constant dense<0.000000e+00> : vector<8x32xf32>
    %40 = vector.multi_reduction <add>, %39, %cst_31 [0] : vector<4x8x32xf32> to vector<8x32xf32>
    %c0_32 = arith.constant 0 : index
    %c0_33 = arith.constant 0 : index
    %41 = vector.load %arg9[%c0_32, %c0_33] : memref<1x32xf32, #tpu.memory_space<vmem>>, vector<1x32xf32>
    %42 = vector.broadcast %41 : vector<1x32xf32> to vector<8x32xf32>
    %43 = arith.addf %40, %42 : vector<8x32xf32>
    %44 = arith.addf %1, %43 : vector<8x32xf32>
    %c0_34 = arith.constant 0 : index
    %c0_35 = arith.constant 0 : index
    %45 = vector.load %arg10[%c0_34, %c0_35] : memref<1x32xf32, #tpu.memory_space<vmem>>, vector<1x32xf32>
    %c0_36 = arith.constant 0 : index
    %c0_37 = arith.constant 0 : index
    %46 = vector.load %arg11[%c0_36, %c0_37] : memref<1x32xf32, #tpu.memory_space<vmem>>, vector<1x32xf32>
    %cst_38 = arith.constant dense<0.000000e+00> : vector<8xf32>
    %47 = vector.multi_reduction <add>, %44, %cst_38 [1] : vector<8x32xf32> to vector<8xf32>
    %48 = vector.shape_cast %47 : vector<8xf32> to vector<8x1xf32>
    %cst_39 = arith.constant 3.200000e+01 : f32
    %49 = vector.broadcast %cst_39 : f32 to vector<8x1xf32>
    %50 = arith.divf %48, %49 : vector<8x1xf32>
    %51 = vector.broadcast %50 : vector<8x1xf32> to vector<8x32xf32>
    %52 = arith.subf %44, %51 : vector<8x32xf32>
    %53 = arith.mulf %52, %52 : vector<8x32xf32>
    %cst_40 = arith.constant dense<0.000000e+00> : vector<8xf32>
    %54 = vector.multi_reduction <add>, %53, %cst_40 [1] : vector<8x32xf32> to vector<8xf32>
    %55 = vector.shape_cast %54 : vector<8xf32> to vector<8x1xf32>
    %cst_41 = arith.constant 3.200000e+01 : f32
    %56 = vector.broadcast %cst_41 : f32 to vector<8x1xf32>
    %57 = arith.divf %55, %56 : vector<8x1xf32>
    %cst_42 = arith.constant 9.99999974E-6 : f32
    %58 = vector.broadcast %cst_42 : f32 to vector<8x1xf32>
    %59 = arith.addf %57, %58 : vector<8x1xf32>
    %60 = math.rsqrt %59 : vector<8x1xf32>
    %61 = vector.broadcast %60 : vector<8x1xf32> to vector<8x32xf32>
    %62 = arith.mulf %52, %61 : vector<8x32xf32>
    %63 = vector.broadcast %45 : vector<1x32xf32> to vector<8x32xf32>
    %64 = arith.mulf %62, %63 : vector<8x32xf32>
    %65 = vector.broadcast %46 : vector<1x32xf32> to vector<8x32xf32>
    %66 = arith.addf %64, %65 : vector<8x32xf32>
    %67 = arith.truncf %66 : vector<8x32xf32> to vector<8x32xbf16>
    %c0_43 = arith.constant 0 : index
    %c0_44 = arith.constant 0 : index
    %68 = vector.load %arg12[%c0_43, %c0_44] : memref<32x64xbf16, #tpu.memory_space<vmem>>, vector<32x64xbf16>
    %cst_45 = arith.constant dense<0.000000e+00> : vector<8x64xf32>
    %69 = tpu.matmul %67, %68, %cst_45 {dimension_numbers = #tpu.dot_dimension_numbers<[1], [0], [0], [1], [0, 0, 1, 1], [], []>} : vector<8x32xbf16>, vector<32x64xbf16>, vector<8x64xf32> -> vector<8x64xf32>
    %c0_46 = arith.constant 0 : index
    %c0_47 = arith.constant 0 : index
    %70 = vector.load %arg13[%c0_46, %c0_47] : memref<1x64xf32, #tpu.memory_space<vmem>>, vector<1x64xf32>
    %71 = vector.broadcast %70 : vector<1x64xf32> to vector<8x64xf32>
    %72 = arith.addf %69, %71 : vector<8x64xf32>
    %cst_48 = arith.constant 0.000000e+00 : f32
    %73 = vector.broadcast %cst_48 : f32 to vector<8x64xf32>
    %74 = arith.maximumf %72, %73 : vector<8x64xf32>
    %75 = arith.truncf %74 : vector<8x64xf32> to vector<8x64xbf16>
    %c0_49 = arith.constant 0 : index
    %c0_50 = arith.constant 0 : index
    %76 = vector.load %arg14[%c0_49, %c0_50] : memref<64x32xbf16, #tpu.memory_space<vmem>>, vector<64x32xbf16>
    %cst_51 = arith.constant dense<0.000000e+00> : vector<8x32xf32>
    %77 = tpu.matmul %75, %76, %cst_51 {dimension_numbers = #tpu.dot_dimension_numbers<[1], [0], [0], [1], [0, 0, 1, 1], [], []>} : vector<8x64xbf16>, vector<64x32xbf16>, vector<8x32xf32> -> vector<8x32xf32>
    %c0_52 = arith.constant 0 : index
    %c0_53 = arith.constant 0 : index
    %78 = vector.load %arg15[%c0_52, %c0_53] : memref<1x32xf32, #tpu.memory_space<vmem>>, vector<1x32xf32>
    %79 = vector.broadcast %78 : vector<1x32xf32> to vector<8x32xf32>
    %80 = arith.addf %77, %79 : vector<8x32xf32>
    %81 = arith.addf %66, %80 : vector<8x32xf32>
    %c0_54 = arith.constant 0 : index
    %c0_55 = arith.constant 0 : index
    %82 = vector.load %arg16[%c0_54, %c0_55] : memref<1x32xf32, #tpu.memory_space<vmem>>, vector<1x32xf32>
    %c0_56 = arith.constant 0 : index
    %c0_57 = arith.constant 0 : index
    %83 = vector.load %arg17[%c0_56, %c0_57] : memref<1x32xf32, #tpu.memory_space<vmem>>, vector<1x32xf32>
    %cst_58 = arith.constant dense<0.000000e+00> : vector<8xf32>
    %84 = vector.multi_reduction <add>, %81, %cst_58 [1] : vector<8x32xf32> to vector<8xf32>
    %85 = vector.shape_cast %84 : vector<8xf32> to vector<8x1xf32>
    %cst_59 = arith.constant 3.200000e+01 : f32
    %86 = vector.broadcast %cst_59 : f32 to vector<8x1xf32>
    %87 = arith.divf %85, %86 : vector<8x1xf32>
    %88 = vector.broadcast %87 : vector<8x1xf32> to vector<8x32xf32>
    %89 = arith.subf %81, %88 : vector<8x32xf32>
    %90 = arith.mulf %89, %89 : vector<8x32xf32>
    %cst_60 = arith.constant dense<0.000000e+00> : vector<8xf32>
    %91 = vector.multi_reduction <add>, %90, %cst_60 [1] : vector<8x32xf32> to vector<8xf32>
    %92 = vector.shape_cast %91 : vector<8xf32> to vector<8x1xf32>
    %cst_61 = arith.constant 3.200000e+01 : f32
    %93 = vector.broadcast %cst_61 : f32 to vector<8x1xf32>
    %94 = arith.divf %92, %93 : vector<8x1xf32>
    %cst_62 = arith.constant 9.99999974E-6 : f32
    %95 = vector.broadcast %cst_62 : f32 to vector<8x1xf32>
    %96 = arith.addf %94, %95 : vector<8x1xf32>
    %97 = math.rsqrt %96 : vector<8x1xf32>
    %98 = vector.broadcast %97 : vector<8x1xf32> to vector<8x32xf32>
    %99 = arith.mulf %89, %98 : vector<8x32xf32>
    %100 = vector.broadcast %82 : vector<1x32xf32> to vector<8x32xf32>
    %101 = arith.mulf %99, %100 : vector<8x32xf32>
    %102 = vector.broadcast %83 : vector<1x32xf32> to vector<8x32xf32>
    %103 = arith.addf %101, %102 : vector<8x32xf32>
    %c0_63 = arith.constant 0 : index
    %c0_64 = arith.constant 0 : index
    %c0_65 = arith.constant 0 : index
    %104 = vector.load %arg18[%c0_63, %c0_64, %c0_65] : memref<1x8x32xf32, #tpu.memory_space<vmem>>, vector<1x8x32xf32>
    %105 = vector.shape_cast %104 : vector<1x8x32xf32> to vector<8x32xf32>
    %106 = vector.shape_cast %103 : vector<8x32xf32> to vector<1x8x32xf32>
    tpu.vector_store %arg18[%c0_63, %c0_64, %c0_65], %106 {strides = array<i32>} : memref<1x8x32xf32, #tpu.memory_space<vmem>>, vector<1x8x32xf32>,
    return
  }
  func.func @transform_0(%arg0: i32) -> (i32, i32, i32) {
    %c0_i32 = arith.constant 0 : i32
    %c0_i32_0 = arith.constant 0 : i32
    %c0_i32_1 = arith.constant 0 : i32
    return %arg0, %c0_i32, %c0_i32_0 : i32, i32, i32
  }
  func.func @transform_1(%arg0: i32) -> (i32, i32, i32) {
    %c0_i32 = arith.constant 0 : i32
    %c0_i32_0 = arith.constant 0 : i32
    %c0_i32_1 = arith.constant 0 : i32
    %c0_i32_2 = arith.constant 0 : i32
    return %c0_i32, %c0_i32_0, %c0_i32_1 : i32, i32, i32
  }
  func.func @transform_2(%arg0: i32) -> (i32, i32, i32) {
    %c0_i32 = arith.constant 0 : i32
    %c0_i32_0 = arith.constant 0 : i32
    %c0_i32_1 = arith.constant 0 : i32
    %c0_i32_2 = arith.constant 0 : i32
    return %c0_i32, %c0_i32_0, %c0_i32_1 : i32, i32, i32
  }
  func.func @transform_3(%arg0: i32) -> (i32, i32, i32) {
    %c0_i32 = arith.constant 0 : i32
    %c0_i32_0 = arith.constant 0 : i32
    %c0_i32_1 = arith.constant 0 : i32
    %c0_i32_2 = arith.constant 0 : i32
    return %c0_i32, %c0_i32_0, %c0_i32_1 : i32, i32, i32
  }
  func.func @transform_4(%arg0: i32) -> (i32, i32, i32) {
    %c0_i32 = arith.constant 0 : i32
    %c0_i32_0 = arith.constant 0 : i32
    %c0_i32_1 = arith.constant 0 : i32
    %c0_i32_2 = arith.constant 0 : i32
    return %c0_i32, %c0_i32_0, %c0_i32_1 : i32, i32, i32
  }
  func.func @transform_5(%arg0: i32) -> (i32, i32, i32) {
    %c0_i32 = arith.constant 0 : i32
    %c0_i32_0 = arith.constant 0 : i32
    %c0_i32_1 = arith.constant 0 : i32
    %c0_i32_2 = arith.constant 0 : i32
    return %c0_i32, %c0_i32_0, %c0_i32_1 : i32, i32, i32
  }
  func.func @transform_6(%arg0: i32) -> (i32, i32, i32) {
    %c0_i32 = arith.constant 0 : i32
    %c0_i32_0 = arith.constant 0 : i32
    %c0_i32_1 = arith.constant 0 : i32
    %c0_i32_2 = arith.constant 0 : i32
    return %c0_i32, %c0_i32_0, %c0_i32_1 : i32, i32, i32
  }
  func.func @transform_7(%arg0: i32) -> (i32, i32, i32) {
    %c0_i32 = arith.constant 0 : i32
    %c0_i32_0 = arith.constant 0 : i32
    %c0_i32_1 = arith.constant 0 : i32
    %c0_i32_2 = arith.constant 0 : i32
    return %c0_i32, %c0_i32_0, %c0_i32_1 : i32, i32, i32
  }
  func.func @transform_8(%arg0: i32) -> (i32, i32) {
    %c0_i32 = arith.constant 0 : i32
    %c0_i32_0 = arith.constant 0 : i32
    %c0_i32_1 = arith.constant 0 : i32
    return %c0_i32, %c0_i32_0 : i32, i32
  }
  func.func @transform_9(%arg0: i32) -> (i32, i32) {
    %c0_i32 = arith.constant 0 : i32
    %c0_i32_0 = arith.constant 0 : i32
    %c0_i32_1 = arith.constant 0 : i32
    return %c0_i32, %c0_i32_0 : i32, i32
  }
  func.func @transform_10(%arg0: i32) -> (i32, i32) {
    %c0_i32 = arith.constant 0 : i32
    %c0_i32_0 = arith.constant 0 : i32
    %c0_i32_1 = arith.constant 0 : i32
    return %c0_i32, %c0_i32_0 : i32, i32
  }
  func.func @transform_11(%arg0: i32) -> (i32, i32) {
    %c0_i32 = arith.constant 0 : i32
    %c0_i32_0 = arith.constant 0 : i32
    %c0_i32_1 = arith.constant 0 : i32
    return %c0_i32, %c0_i32_0 : i32, i32
  }
  func.func @transform_12(%arg0: i32) -> (i32, i32) {
    %c0_i32 = arith.constant 0 : i32
    %c0_i32_0 = arith.constant 0 : i32
    %c0_i32_1 = arith.constant 0 : i32
    return %c0_i32, %c0_i32_0 : i32, i32
  }
  func.func @transform_13(%arg0: i32) -> (i32, i32) {
    %c0_i32 = arith.constant 0 : i32
    %c0_i32_0 = arith.constant 0 : i32
    %c0_i32_1 = arith.constant 0 : i32
    return %c0_i32, %c0_i32_0 : i32, i32
  }
  func.func @transform_14(%arg0: i32) -> (i32, i32) {
    %c0_i32 = arith.constant 0 : i32
    %c0_i32_0 = arith.constant 0 : i32
    %c0_i32_1 = arith.constant 0 : i32
    return %c0_i32, %c0_i32_0 : i32, i32
  }
  func.func @transform_15(%arg0: i32) -> (i32, i32) {
    %c0_i32 = arith.constant 0 : i32
    %c0_i32_0 = arith.constant 0 : i32
    %c0_i32_1 = arith.constant 0 : i32
    return %c0_i32, %c0_i32_0 : i32, i32
  }
  func.func @transform_16(%arg0: i32) -> (i32, i32) {
    %c0_i32 = arith.constant 0 : i32
    %c0_i32_0 = arith.constant 0 : i32
    %c0_i32_1 = arith.constant 0 : i32
    return %c0_i32, %c0_i32_0 : i32, i32
  }
  func.func @transform_17(%arg0: i32) -> (i32, i32, i32) {
    %c0_i32 = arith.constant 0 : i32
    %c0_i32_0 = arith.constant 0 : i32
    %c0_i32_1 = arith.constant 0 : i32
    return %arg0, %c0_i32, %c0_i32_0 : i32, i32, i32
  }
}

</mosaic_0001>

<bundles_post_ra>
// kernel: tpu_custom_call.1
= control target key start
LH: loop header
LB: loop body
LE: loop exit
PB: predicated region body
PF: predicated region fallthrough
CT: control target
= control target key end

     0   :  { %s3241_s0 = inlined_call_operand.vmem [shape: f32[2,8,32], index: 0, kind: input, shape index: {}]   ;;  %s3242_s1 = inlined_call_operand.vmem [shape: bf16[4,32,8], index: 1, kind: input, shape index: {}]   ;;  %s3243_s2 = inlined_call_operand.vmem [shape: bf16[4,32,8], index: 2, kind: input, shape index: {}]   ;;  %s3244_s3 = inlined_call_operand.vmem [shape: bf16[4,32,8], index: 3, kind: input, shape index: {}]   ;;  %s3245_s4 = inlined_call_operand.vmem [shape: f32[4,1,8], index: 4, kind: input, shape index: {}]   ;;  %s3246_s5 = inlined_call_operand.vmem [shape: f32[4,1,8], index: 5, kind: input, shape index: {}]   ;;  %s3247_s6 = inlined_call_operand.vmem [shape: f32[4,1,8], index: 6, kind: input, shape index: {}]   ;;  %s3248_s7 = inlined_call_operand.vmem [shape: bf16[4,8,32], index: 7, kind: input, shape index: {}]   ;;  %s3249_s8 = inlined_call_operand.vmem [shape: f32[1,32], index: 8, kind: input, shape index: {}]   ;;  %s3250_s9 = inlined_call_operand.vmem [shape: f32[1,32], index: 9, kind: input, shape index: {}]   ;;  %s3251_s10 = inlined_call_operand.vmem [shape: f32[1,32], index: 10, kind: input, shape index: {}]   ;;  %s3252_s11 = inlined_call_operand.vmem [shape: bf16[32,64], index: 11, kind: input, shape index: {}]   ;;  %s3253_s12 = inlined_call_operand.vmem [shape: f32[1,64], index: 12, kind: input, shape index: {}]   ;;  %s3254_s13 = inlined_call_operand.vmem [shape: bf16[64,32], index: 13, kind: input, shape index: {}]   ;;  %s3255_s14 = inlined_call_operand.vmem [shape: f32[1,32], index: 14, kind: input, shape index: {}]   ;;  %s3256_s15 = inlined_call_operand.vmem [shape: f32[1,32], index: 15, kind: input, shape index: {}]   ;;  %s3257_s16 = inlined_call_operand.vmem [shape: f32[1,32], index: 16, kind: input, shape index: {}]   ;;  %s3258_s17 = inlined_call_operand.hbm [shape: f32[2,8,32], index: 17, kind: output, shape index: {}]  }
   0x1   :  { %3265 = sst [smem:[#allocation10_spill]] %s3241_s0 }
   0x2   :  { %3266 = sst [smem:[#allocation11_spill]] %s3242_s1 }
   0x3   :  { %3267 = sst [smem:[#allocation12_spill]] %s3243_s2 }
   0x4   :  { %3268 = sst [smem:[#allocation13_spill]] %s3244_s3 }
   0x5   :  { %3269 = sst [smem:[#allocation14_spill]] %s3245_s4 }
   0x6   :  { %22 = vsyncpa [#allocation3], 0 }
   0x7   :  { %24 = vsyncpa [#allocation3 + $0x1], 0  ;;  %s2822_s24 = smov 0   ;;  %s2824_s25 = smov 0  }
   0x8   :  { %s2826_s26 = smov 0   ;;  %s2828_s27 = smov 0  }
   0x9 LB: > { %3270 = sst [smem:[#allocation5_spill]] %s2715_s24  ;;  %s2843_s28 = sadd.s32 4294967295, %s2727_s27   ;;  %s2727_s27 = sphi %s2828_s27, %s3284_s27   ;;  %s2723_s26 = sphi %s2826_s26, %s3286_s26   ;;  %s2719_s25 = sphi %s2824_s25, %s3288_s25   ;;  %s2715_s24 = sphi %s2822_s24, %s3287_s24  }
   0xa   : > { %3271 = sst [smem:[#allocation6_spill]] %s2723_s26  ;;  %s2235_s29 = sadd.s32 4294967294, %s2727_s27  }
   0xb   : > { %s2847_s0 = sadd.s32 1, %s2727_s27   ;;  %s399_s30 = sadd.s32 1, %s2723_s26 }
   0xc   : > { %3272 = sst [smem:[#allocation7_spill]] %s2847_s0  ;;  %s396_s18 = ssub.s32 %s2727_s27, %s2847_s0 }
   0xd   : > { %p409_p0 = scmp.ne.s32.totalorder %s2723_s26, %s2719_s25  ;;  %p397_p1 = scmp.eq.s32.totalorder %s396_s18, 0 }
   0xe   : > { %p410_p2 = scmp.eq.s32.totalorder %s2843_s28, 1  ;;  %p415_p3 = scmp.ne.s32.totalorder %s2719_s25, %s2715_s24 }
   0xf   : > { %p416_p4 = scmp.eq.s32.totalorder %s2235_s29, 1  ;;  %p2238_p7 = scmp.ge.s32.totalorder %s2727_s27, 1 }
  0x10   : > { %s2858_s19 = scalar_select %p397_p1, %s2723_s26, %s399_s30  }
  0x11   : > { %p2860_p5 = por %p410_p2, %p409_p0  ;;  %p2864_p6 = por %p416_p4, %p415_p3 }
  0x12   : > { %3273 = sst [smem:[#allocation8_spill]] %s2858_s19  ;;  %p489_p8 = scmp.lt.s32.totalorder %s2727_s27, 3 }
  0x13   : > { %s3275_s20 = scalar_select %p2864_p6, 1, 0 }
  0x14   : > { %p490_p9 = pnand %p2238_p7, %p489_p8 }
  0x15   : > { %3276 = sst [smem:[#allocation9_spill]] %s3275_s20  ;;  %p540_p10 = scmp.lt.s32.totalorder (!%p490_p9), %s2843_s28, 1 }
  0x16   : > { %493 = sbr.rel (%p490_p9) target bundleno = 2198 (0x896), region = 88  ;;  %s3277_s23 = sld [smem:[#allocation11_spill]] (!%p490_p9) }
  0x17   : > { %s3278_s20 = sld [smem:[#allocation10_spill]] (!%p490_p9)  ;;  %s537_s26 = sand.u32 (!%p490_p9), 1, %s2719_s25  }
  0x18   : > { %s3279_s2 = sld [smem:[#allocation12_spill]] (!%p490_p9)  ;;  %s2239_s0 = sshll.u32 (!%p490_p9), %s537_s26, 3 }
  0x19   : > { %s3280_s3 = sld [smem:[#allocation13_spill]] (!%p490_p9)  ;;  %s2317_s30 = sshll.u32 (!%p490_p9), %s2843_s28, 7 }
  0x1a   : > { %s3281_s4 = sld [smem:[#allocation14_spill]] (!%p490_p9)  ;;  %s539_s18 = scalar_lea.vmem (!%p490_p9), [#allocation2], %s2239_s0 }
  0x1b   : > { %v2729_v1 = vmov 0.0   ;;  %vm2730_vm0 = vmmov 0   ;;  %s541_s29 = scalar_select %p540_p10, %s2843_s28, 1  ;;  %vm603_vm1 = vcmask 261120   ;;  %v2257_v43 = vld [vmem:[%s3246_s5] ss:$0 sm:$0xff] }
  0x1c   : > { %v2617_v0 = vld [vmem:[%s3277_s23 + $0x8] sm:$0xff]   ;;  %2388 = vmatprep.subr.bf16.mxu0 %v2729_v1  ;;  %2396 = vmatprep.subr.bf16.mxu1 %v2729_v1  ;;  %v2618_v2 = vld [vmem:[%s3277_s23 + $0x18] sm:$0xff]   ;;  %v2619_v3 = vld [vmem:[%s3277_s23] sm:$0xff]   ;;  %vm1323_vm2 = vcmask 64512   ;;  %vm1559_vm3 = vcmask 1043456   ;;  %vm2087_vm4 = vcmask 523264  }
  0x1d   : > { %2389 = vmatpush3.bf16.msra.mxu0 %v2617_v0  ;;  %2392 = vmatprep.mubr.msk.bf16.mxu0 %vm2730_vm0, %v2729_v1  ;;  %v2620_v4 = vld [vmem:[%s3277_s23 + $0x10] sm:$0xff]   ;;  %s2240_s19 = sshll.u32 %s541_s29, 3  ;;  %v2621_v5 = vld [vmem:[%s3277_s23 + $0x28] sm:$0xff]   ;;  %v2622_v6 = vld [vmem:[%s3277_s23 + $0x38] sm:$0xff]   ;;  %s2176_s21 = sshll.u32 %s539_s18, 4  ;;  %s2177_s21 = int_to_ptr.vmem [resolvable:$true] %s2176_s21 }
  0x1e   : > { %2397 = vmatpush3.bf16.msra.mxu1 %v2618_v2  ;;  %2390 = vmatprep.subr.bf16.mxu0 %v2729_v1  ;;  %s543_s24 = scalar_lea.vmem %s3278_s20, %s2240_s19  ;;  %v2623_v9 = vld [vmem:[%s3277_s23 + $0x20] sm:$0xff]   ;;  %v2624_v10 = vld [vmem:[%s3277_s23 + $0x30] sm:$0xff]   ;;  %v2625_v11 = vld [vmem:[%s3279_s2 + $0x8] sm:$0xff]   ;;  %s2731_s20 = smov [#allocation2]  }
  0x1f   : > { %2398 = vmatprep.subr.bf16.mxu1 %v2729_v1  ;;  %2400 = vmatprep.mubr.msk.bf16.mxu1 %vm2730_vm0, %v2729_v1  ;;  %v2902_v7 = vld [vmem:[%s543_s24] sm:$0xff]  ;;  %v2626_v12 = vld [vmem:[%s3279_s2 + $0x18] sm:$0xff]   ;;  %v2628_v14 = vld [vmem:[%s3279_s2 + $0x10] sm:$0xff]   ;;  %s2667_s24 = scalar_lea.vmem %s2177_s21, 128  ;;  %s2671_s29 = sshll.u32 %s2731_s20, 4  ;;  %s2672_s29 = int_to_ptr.vmem [resolvable:$false] %s2671_s29 }
  0x20   : > { %v2907_v8 = vpack.c.bf16 %v2902_v7, %v2902_v7  ;;  %v2627_v13 = vld [vmem:[%s3279_s2] sm:$0xff]   ;;  %v2629_v15 = vld [vmem:[%s3279_s2 + $0x28] sm:$0xff]   ;;  %v2630_v16 = vld [vmem:[%s3279_s2 + $0x38] sm:$0xff]   ;;  %p2668_p11 = scmp.ne.s32.totalorder %s2177_s21, %s2667_s24  ;;  %s2673_s28 = scalar_lea.vmem %s2672_s29, 256 }
  0x21   : > { %2391 = vmatpush3.bf16.msra.mxu0 %v2619_v3  ;;  %v2631_v17 = vld [vmem:[%s3279_s2 + $0x20] sm:$0xff]   ;;  %v2632_v18 = vld [vmem:[%s3279_s2 + $0x30] sm:$0xff]   ;;  %v2633_v19 = vld [vmem:[%s3280_s3 + $0x8] sm:$0xff]   ;;  %p2674_p0 = scmp.lt.s32.totalorder %s2177_s21, %s2672_s29  ;;  %p2675_p1 = scmp.lt.s32.totalorder %s2673_s28, %s2667_s24 }
  0x22   : > { %2399 = vmatpush3.bf16.msra.mxu1 %v2620_v4  ;;  %2404 = vmatprep.subr.bf16.mxu0 %v2729_v1  ;;  %v2634_v20 = vld [vmem:[%s3280_s3] sm:$0xff]   ;;  %v2635_v21 = vld [vmem:[%s3280_s3 + $0x18] sm:$0xff]   ;;  %v2636_v22 = vld [vmem:[%s3280_s3 + $0x10] sm:$0xff]   ;;  %p2669_p12 = pnand %p2668_p11, %p2860_p5 }
  0x23   : > { %2412 = vmatprep.subr.bf16.mxu1 %v2729_v1  ;;  %v2637_v23 = vld [vmem:[%s3280_s3 + $0x28] sm:$0xff]   ;;  %v2638_v24 = vld [vmem:[%s3280_s3 + $0x20] sm:$0xff]   ;;  %v2639_v25 = vld [vmem:[%s3280_s3 + $0x38] sm:$0xff]   ;;  %p2676_p2 = por %p2675_p1, %p2674_p0 }
  0x24   : > { %2393 = vmatmul.mubr.msk.bf16.vlgmr.msra.gmra.mxu0 %vm603_vm1, %v2907_v8  ;;  %v2640_v26 = vld [vmem:[%s3280_s3 + $0x30] sm:$0xff]   ;;  %v2258_v44 = vld [vmem:[%s3246_s5 + $0x1] ss:$0 sm:$0xff]  ;;  %v2241_v45 = vld [vmem:[%s3281_s4] ss:$0 sm:$0xff]  ;;  %s2174_s3 = scalar_lea.hbm %s3258_s17, %s2317_s30  ;;  %p2670_p13 = pneg %p2669_p12 }
  0x25   : > { %2401 = vmatmul.mubr.msk.bf16.vlgmr.msra.gmra.mxu1 %vm603_vm1, %v2907_v8  ;;  %2405 = vmatpush3.bf16.msra.mxu0 %v2621_v5  ;;  %v2242_v46 = vld [vmem:[%s3281_s4 + $0x1] ss:$0 sm:$0xff]  ;;  %v2259_v61 = vld [vmem:[%s3246_s5 + $0x2] ss:$0 sm:$0xff]  ;;  %v2260_v3 = vld [vmem:[%s3246_s5 + $0x3] ss:$0 sm:$0xff] }
  0x26   : > { %2413 = vmatpush3.bf16.msra.mxu1 %v2622_v6  ;;  %2406 = vmatprep.subr.bf16.mxu0 %v2729_v1  ;;  %v2243_v4 = vld [vmem:[%s3281_s4 + $0x2] ss:$0 sm:$0xff]  ;;  %v2244_v5 = vld [vmem:[%s3281_s4 + $0x3] ss:$0 sm:$0xff]  ;;  %s2163_s4 = scalar_lea.sflag [#allocation3], %s537_s26  ;;  %p2677_p3 = pnand %p2676_p2, %p2670_p13 }
  0x27   : > { %2414 = vmatprep.subr.bf16.mxu1 %v2729_v1  ;;  %2408 = vmatprep.mubr.msk.bf16.mxu0 %vm2730_vm0, %v2729_v1 }
  0x28   : > { %2416 = vmatprep.mubr.msk.bf16.mxu1 %vm2730_vm0, %v2729_v1 }
  0x29   : > { %2407 = vmatpush3.bf16.msra.mxu0 %v2623_v9 }
  0x2a   : > { %2415 = vmatpush3.bf16.msra.mxu1 %v2624_v10  ;;  %2420 = vmatprep.subr.bf16.mxu0 %v2729_v1 }
  0x2b   : > { %2428 = vmatprep.subr.bf16.mxu1 %v2729_v1 }
  0x2c   : > { %2409 = vmatmul.mubr.msk.bf16.vlgmr.msra.gmra.mxu0 %vm603_vm1, %v2907_v8 }
  0x2d   : > { %2417 = vmatmul.mubr.msk.bf16.vlgmr.msra.gmra.mxu1 %vm603_vm1, %v2907_v8  ;;  %2421 = vmatpush3.bf16.msra.mxu0 %v2625_v11 }
  0x2e   : > { %2429 = vmatpush3.bf16.msra.mxu1 %v2626_v12  ;;  %2422 = vmatprep.subr.bf16.mxu0 %v2729_v1 }
  0x2f   : > { %2430 = vmatprep.subr.bf16.mxu1 %v2729_v1  ;;  %2424 = vmatprep.mubr.msk.bf16.mxu0 %vm2730_vm0, %v2729_v1 }
  0x30   : > { %2432 = vmatprep.mubr.msk.bf16.mxu1 %vm2730_vm0, %v2729_v1 }
  0x31   : > { %2423 = vmatpush3.bf16.msra.mxu0 %v2627_v13 }
  0x32   : > { %2431 = vmatpush3.bf16.msra.mxu1 %v2628_v14  ;;  %2436 = vmatprep.subr.bf16.mxu0 %v2729_v1 }
  0x33   : > { %2444 = vmatprep.subr.bf16.mxu1 %v2729_v1 }
  0x34   : > { %2425 = vmatmul.mubr.msk.bf16.vlgmr.msra.gmra.mxu0 %vm603_vm1, %v2907_v8 }
  0x35   : > { %2433 = vmatmul.mubr.msk.bf16.vlgmr.msra.gmra.mxu1 %vm603_vm1, %v2907_v8  ;;  %2437 = vmatpush3.bf16.msra.mxu0 %v2629_v15 }
  0x36   : > { %2445 = vmatpush3.bf16.msra.mxu1 %v2630_v16  ;;  %2438 = vmatprep.subr.bf16.mxu0 %v2729_v1 }
  0x37   : > { %2446 = vmatprep.subr.bf16.mxu1 %v2729_v1  ;;  %2440 = vmatprep.mubr.msk.bf16.mxu0 %vm2730_vm0, %v2729_v1 }
  0x38   : > { %2448 = vmatprep.mubr.msk.bf16.mxu1 %vm2730_vm0, %v2729_v1 }
  0x39   : > { %2439 = vmatpush3.bf16.msra.mxu0 %v2631_v17 }
  0x3a   : > { %2447 = vmatpush3.bf16.msra.mxu1 %v2632_v18  ;;  %2452 = vmatprep.subr.bf16.mxu0 %v2729_v1 }
  0x3b   : > { %2460 = vmatprep.subr.bf16.mxu1 %v2729_v1 }
  0x3c   : > { %2441 = vmatmul.mubr.msk.bf16.vlgmr.msra.gmra.mxu0 %vm603_vm1, %v2907_v8 }
  0x3d   : > { %2449 = vmatmul.mubr.msk.bf16.vlgmr.msra.gmra.mxu1 %vm603_vm1, %v2907_v8  ;;  %2456 = vmatprep.mubr.msk.bf16.mxu0 %vm2730_vm0, %v2729_v1 }
  0x3e   : > { %2464 = vmatprep.mubr.msk.bf16.mxu1 %vm2730_vm0, %v2729_v1  ;;  %2453 = vmatpush3.bf16.msra.mxu0 %v2633_v19 }
  0x3f   : > { %2454 = vmatprep.subr.bf16.mxu0 %v2729_v1  ;;  %2461 = vmatpush3.bf16.msra.mxu1 %v2635_v21 }
  0x40   : > { %2462 = vmatprep.subr.bf16.mxu1 %v2729_v1 }
  0x42   : > { %2455 = vmatpush3.bf16.msra.mxu0 %v2634_v20 }
  0x43   : > { %2468 = vmatprep.subr.bf16.mxu0 %v2729_v1  ;;  %2463 = vmatpush3.bf16.msra.mxu1 %v2636_v22 }
  0x44   : > { %2476 = vmatprep.subr.bf16.mxu1 %v2729_v1 }
  0x45   : > { %2457 = vmatmul.mubr.msk.bf16.vlgmr.msra.gmra.mxu0 %vm603_vm1, %v2907_v8 }
  0x46   : > { %2469 = vmatpush3.bf16.msra.mxu0 %v2637_v23  ;;  %2472 = vmatprep.mubr.msk.bf16.mxu0 %vm2730_vm0, %v2729_v1 }
  0x47   : > { %2470 = vmatprep.subr.bf16.mxu0 %v2729_v1  ;;  %2465 = vmatmul.mubr.msk.bf16.vlgmr.msra.gmra.mxu1 %vm603_vm1, %v2907_v8 }
  0x48   : > { %2477 = vmatpush3.bf16.msra.mxu1 %v2639_v25  ;;  %2480 = vmatprep.mubr.msk.bf16.mxu1 %vm2730_vm0, %v2729_v1 }
  0x49   : > { %2478 = vmatprep.subr.bf16.mxu1 %v2729_v1 }
  0x4a   : > { %2471 = vmatpush3.bf16.msra.mxu0 %v2638_v24 }
  0x4b   : > { %2484 = vmatprep.subr.bf16.mxu0 %v2729_v1 }
  0x4c   : > { %2479 = vmatpush3.bf16.msra.mxu1 %v2640_v26 }
  0x4d   : > { %2473 = vmatmul.mubr.msk.bf16.vlgmr.msra.gmra.mxu0 %vm603_vm1, %v2907_v8  ;;  %2490 = vmatprep.subr.bf16.mxu1 %v2729_v1 }
  0x4e   : > { %2486 = vmatprep.mubr.msk.bf16.mxu0 %vm2730_vm0, %v2729_v1 }
  0x4f   : > { %2481 = vmatmul.mubr.msk.bf16.vlgmr.msra.gmra.mxu1 %vm603_vm1, %v2907_v8 }
  0x50   : > { %2492 = vmatprep.mubr.msk.bf16.mxu1 %vm2730_vm0, %v2729_v1 }
  0xe4   : > { %v641_v27 = vpop.f32.mrf.mxu0 }
  0xe5   : > { %v693_v28 = vpop.f32.mrf.mxu1  ;;  %v642_v51 = vadd.f32 %v2241_v45, %v641_v27 }
  0xe6   : > { %v2394_v29 = vpop.f32.mrf.mxu0  ;;  %v694_v52 = vadd.f32 %v2242_v46, %v693_v28 }
  0xe7   : > { %v2402_v30 = vpop.f32.mrf.mxu1  ;;  %v803_v62 = vmul.f32 0.35355338, %v642_v51  ;;  %v2273_v29 = vld [vmem:[%s3247_s6] ss:$0 sm:$0xff] }
  0xe8   : > { %v644_v31 = vpop.f32.mrf.mxu0  ;;  %v804_v63 = vmul.f32 0.35355338, %v694_v52 }
  0xe9   : > { %v696_v32 = vpop.f32.mrf.mxu1  ;;  %v807_v11 = vpack.c.bf16 %v803_v62, %v803_v62 }
  0xea   : > { %v2395_v33 = vpop.f32.mrf.mxu0  ;;  %v808_v12 = vpack.c.bf16 %v804_v63, %v804_v63 }
  0xeb   : > { %v2403_v34 = vpop.f32.mrf.mxu1  ;;  %v2274_v33 = vld [vmem:[%s3247_s6 + $0x1] ss:$0 sm:$0xff] }
  0xec   : > { %v745_v35 = vpop.f32.mrf.mxu0 }
  0xed   : > { %v797_v36 = vpop.f32.mrf.mxu1  ;;  %v746_v15 = vadd.f32 %v2243_v4, %v745_v35 }
  0xee   : > { %v2410_v37 = vpop.f32.mrf.mxu0  ;;  %v798_v16 = vadd.f32 %v2244_v5, %v797_v36 }
  0xef   : > { %v2418_v38 = vpop.f32.mrf.mxu1  ;;  %v805_v25 = vmul.f32 0.35355338, %v746_v15 }
  0xf0   : > { %v748_v39 = vpop.f32.mrf.mxu0  ;;  %v806_v26 = vmul.f32 0.35355338, %v798_v16 }
  0xf1   : > { %v800_v40 = vpop.f32.mrf.mxu1  ;;  %v809_v27 = vpack.c.bf16 %v805_v25, %v805_v25 }
  0xf2   : > { %v2411_v41 = vpop.f32.mrf.mxu0  ;;  %v810_v28 = vpack.c.bf16 %v806_v26, %v806_v26 }
  0xf3   : > { %v2419_v42 = vpop.f32.mrf.mxu1 }
  0xf4   : > { %v901_v47 = vpop.f32.mrf.mxu0 }
  0xf5   : > { %v953_v48 = vpop.f32.mrf.mxu1  ;;  %v902_v49 = vadd.f32 %v2257_v43, %v901_v47 }
  0xf6   : > { %v954_v50 = vadd.f32 %v2258_v44, %v953_v48  ;;  %v2426_v53 = vpop.f32.mrf.mxu0 }
  0xf7   : > { %v2434_v54 = vpop.f32.mrf.mxu1  ;;  %v1063_v55 = vpack.c.bf16 %v902_v49, %v902_v49 }
  0xf8   : > { %v1064_v56 = vpack.c.bf16 %v954_v50, %v954_v50  ;;  %v904_v57 = vpop.f32.mrf.mxu0 }
  0xf9   : > { %v956_v58 = vpop.f32.mrf.mxu1  ;;  %v1328_v59 = vsel %vm1323_vm2, %v1063_v55, 0 }
  0xfa   : > { %v1374_v60 = vsel %vm1323_vm2, %v1064_v56, 0  ;;  %v2427_v0 = vpop.f32.mrf.mxu0  ;;  %2485 = vmatpush3.bf16.xpose.msra.mxu0 %v1328_v59 }
  0xfb   : > { %v2435_v2 = vpop.f32.mrf.mxu1  ;;  %2491 = vmatpush3.bf16.xpose.msra.mxu1 %v1374_v60  ;;  %2496 = vmatprep.subr.bf16.mxu0 %v2729_v1 }
  0xfc   : > { %2502 = vmatprep.subr.bf16.mxu1 %v2729_v1  ;;  %v1005_v6 = vpop.f32.mrf.mxu0 }
  0xfd   : > { %v1057_v8 = vpop.f32.mrf.mxu1  ;;  %v1006_v9 = vadd.f32 %v2259_v61, %v1005_v6 }
  0xfe   : > { %v1058_v10 = vadd.f32 %v2260_v3, %v1057_v8  ;;  %v2442_v13 = vpop.f32.mrf.mxu0 }
  0xff   : > { %v2450_v14 = vpop.f32.mrf.mxu1  ;;  %v1065_v17 = vpack.c.bf16 %v1006_v9, %v1006_v9 }
 0x100   : > { %v1066_v18 = vpack.c.bf16 %v1058_v10, %v1058_v10  ;;  %v1008_v19 = vpop.f32.mrf.mxu0 }
 0x101   : > { %v1060_v20 = vpop.f32.mrf.mxu1  ;;  %v1420_v21 = vsel %vm1323_vm2, %v1065_v17, 0  ;;  %2487 = vmatmul.mubr.msk.bf16.vlgmr.msra.gmra.mxu0 %vm1323_vm2, %v807_v11 }
 0x102   : > { %v1466_v22 = vsel %vm1323_vm2, %v1066_v18, 0  ;;  %2493 = vmatmul.mubr.msk.bf16.vlgmr.msra.gmra.mxu1 %vm1323_vm2, %v808_v12  ;;  %v2443_v23 = vpop.f32.mrf.mxu0  ;;  %2497 = vmatpush3.bf16.xpose.msra.mxu0 %v1420_v21 }
 0x103   : > { %v2451_v24 = vpop.f32.mrf.mxu1  ;;  %2503 = vmatpush3.bf16.xpose.msra.mxu1 %v1466_v22  ;;  %2498 = vmatprep.mubr.msk.bf16.mxu0 %vm2730_vm0, %v2729_v1 }
 0x104   : > { %2504 = vmatprep.mubr.msk.bf16.mxu1 %vm2730_vm0, %v2729_v1  ;;  %2508 = vmatprep.subr.bf16.mxu0 %v2729_v1 }
 0x105   : > { %2514 = vmatprep.subr.bf16.mxu1 %v2729_v1  ;;  %v1157_v30 = vpop.f32.mrf.mxu0 }
 0x106   : > { %v1158_v31 = vadd.f32 %v2273_v29, %v1157_v30 }
 0x107   : > { %v2458_v32 = vpop.f32.mrf.mxu0  ;;  %v1209_v36 = vpop.f32.mrf.mxu1 }
 0x108   : > { %v1319_v34 = vpack.c.bf16 %v1158_v31, %v1158_v31  ;;  %v1210_v38 = vadd.f32 %v2274_v33, %v1209_v36  ;;  %v2275_v33 = vld [vmem:[%s3247_s6 + $0x2] ss:$0 sm:$0xff]  ;;  %v2276_v36 = vld [vmem:[%s3247_s6 + $0x3] ss:$0 sm:$0xff] }
 0x109   : > { %2499 = vmatmul.mubr.msk.bf16.vlgmr.msra.gmra.mxu0 %vm1323_vm2, %v809_v27  ;;  %v1160_v35 = vpop.f32.mrf.mxu0  ;;  %v2466_v40 = vpop.f32.mrf.mxu1 }
 0x10a   : > { %2505 = vmatmul.mubr.msk.bf16.vlgmr.msra.gmra.mxu1 %vm1323_vm2, %v810_v28  ;;  %2510 = vmatprep.mubr.msk.bf16.mxu0 %vm2730_vm0, %v2729_v1  ;;  %v1561_v37 = vsel %vm1559_vm3, %v1319_v34, 0  ;;  %v1320_v41 = vpack.c.bf16 %v1210_v38, %v1210_v38 }
 0x10b   : > { %2516 = vmatprep.mubr.msk.bf16.mxu1 %vm2730_vm0, %v2729_v1  ;;  %v2459_v39 = vpop.f32.mrf.mxu0  ;;  %2509 = vmatpush3.bf16.msra.mxu0 %v1561_v37  ;;  %v1212_v42 = vpop.f32.mrf.mxu1 }
 0x10c   : > { %2520 = vmatprep.subr.bf16.mxu0 %v2729_v1  ;;  %v1607_v44 = vsel %vm1559_vm3, %v1320_v41, 0 }
 0x10d   : > { %v3083_v43 = vpop.f32.mrf.mxu0  ;;  %v2467_v45 = vpop.f32.mrf.mxu1  ;;  %2515 = vmatpush3.bf16.msra.mxu1 %v1607_v44 }
 0x10e   : > { %2526 = vmatprep.subr.bf16.mxu1 %v2729_v1  ;;  %v1262_v35 = vadd.f32 %v2275_v33, %v3083_v43 }
 0x10f   : > { %v2474_v46 = vpop.f32.mrf.mxu0  ;;  %v3087_v48 = vpop.f32.mrf.mxu1 }
 0x110   : > { %v1321_v39 = vpack.c.bf16 %v1262_v35, %v1262_v35  ;;  %v1314_v40 = vadd.f32 %v2276_v36, %v3087_v48  ;;  %v1745_v48 = vld [vmem:[%s3248_s7] sm:$0xf] }
 0x111   : > { %v1264_v47 = vpop.f32.mrf.mxu0  ;;  %v2482_v50 = vpop.f32.mrf.mxu1 }
 0x112   : > { %v1653_v45 = vsel %vm1559_vm3, %v1321_v39, 0  ;;  %v1322_v46 = vpack.c.bf16 %v1314_v40, %v1314_v40  ;;  %v2301_v39 = vld [vmem:[%s3249_s8] ss:$0 sm:$0xff] }
 0x113   : > { %v2475_v49 = vpop.f32.mrf.mxu0  ;;  %v1316_v51 = vpop.f32.mrf.mxu1 }
 0x114   : > { %v1699_v50 = vsel %vm1559_vm3, %v1322_v46, 0 }
 0x115   : > { %v2483_v52 = vpop.f32.mrf.mxu1 }
 0x1c1   : > { %v1364_v53 = vpop.f32.mrf.mxu0 }
 0x1c2   : > { %v1410_v54 = vpop.f32.mrf.mxu1  ;;  %v1508_v55 = vsel %vm1323_vm2, %v1364_v53, -inf }
 0x1c3   : > { %1509 = vmax.xlane.f32.xlu0 %v1508_v55  ;;  %v2488_v57 = vpop.f32.mrf.mxu0  ;;  %v1511_v60 = vsel %vm1323_vm2, %v1410_v54, -inf }
 0x1c4   : > { %v2494_v56 = vpop.f32.mrf.mxu1  ;;  %v1746_v57 = vld [vmem:[%s3248_s7 + $0x4] sm:$0xf] }
 0x1c5   : > { %v1367_v58 = vpop.f32.mrf.mxu0 }
 0x1c6   : > { %v1413_v59 = vpop.f32.mrf.mxu1  ;;  %v1799_v58 = vsel %vm1559_vm3, %v1746_v57, 0 }
 0x1c7   : > { %1512 = vmax.xlane.f32.xlu0 %v1511_v60  ;;  %v2489_v62 = vpop.f32.mrf.mxu0  ;;  %v1747_v59 = vld [vmem:[%s3248_s7 + $0x8] sm:$0xf] }
 0x1c8   : > { %v2495_v61 = vpop.f32.mrf.mxu1  ;;  %v1845_v62 = vsel %vm1559_vm3, %v1747_v59, 0 }
 0x1c9   : > { %v1456_v63 = vpop.f32.mrf.mxu0 }
 0x1ca   : > { %v1502_v0 = vpop.f32.mrf.mxu1  ;;  %v1514_v2 = vsel %vm1323_vm2, %v1456_v63, -inf }
 0x1cb   : > { %1515 = vmax.xlane.f32.xlu1 %v1514_v2  ;;  %v2500_v4 = vpop.f32.mrf.mxu0  ;;  %v1517_v8 = vsel %vm1323_vm2, %v1502_v0, -inf }
 0x1cc   : > { %v2506_v3 = vpop.f32.mrf.mxu1 }
 0x1cd   : > { %v1459_v5 = vpop.f32.mrf.mxu0 }
 0x1ce   : > { %v1505_v6 = vpop.f32.mrf.mxu1 }
 0x1cf   : > { %1518 = vmax.xlane.f32.xlu1 %v1517_v8  ;;  %v2501_v10 = vpop.f32.mrf.mxu0 }
 0x1d0   : > { %v2507_v9 = vpop.f32.mrf.mxu1 }
 0x24c   : > { %v1510_v11 = vpop.xlane.xlu0 %1509 }
 0x24d   : > { %v1520_v12 = vsub.f32 %v1364_v53, %v1510_v11  ;;  %v1753_v53 = vsel %vm1559_vm3, %v1745_v48, 0 }
 0x24f   : > { %v1524_v13 = vmul.f32 1.442695, %v1520_v12 }
 0x250   : > { %v1513_v14 = vpop.xlane.xlu0 %1512 }
 0x251   : > { %2647 = vpow2.f32 %v1524_v13  ;;  %v1521_v15 = vsub.f32 %v1410_v54, %v1513_v14 }
 0x253   : > { %v1526_v16 = vmul.f32 1.442695, %v1521_v15 }
 0x254   : > { %v1516_v17 = vpop.xlane.xlu1 %1515 }
 0x255   : > { %2649 = vpow2.f32 %v1526_v16  ;;  %v1522_v18 = vsub.f32 %v1456_v63, %v1516_v17 }
 0x257   : > { %v1528_v19 = vmul.f32 1.442695, %v1522_v18 }
 0x258   : > { %v1519_v20 = vpop.xlane.xlu1 %1518 }
 0x259   : > { %2651 = vpow2.f32 %v1528_v19  ;;  %v1523_v21 = vsub.f32 %v1502_v0, %v1519_v20  ;;  %v1748_v0 = vld [vmem:[%s3248_s7 + $0xc] sm:$0xf] }
 0x25a   : > { %v1891_v5 = vsel %vm1559_vm3, %v1748_v0, 0 }
 0x25b   : > { %v1530_v22 = vmul.f32 1.442695, %v1523_v21 }
 0x25d   : > { %2653 = vpow2.f32 %v1530_v22 }
 0x25e   : > { %v2648_v23 = vpop.eup %2647 }
 0x25f   : > { %v1532_v24 = vsel %vm1323_vm2, %v2648_v23, 0.0 }
 0x260   : > { %1533 = vadd.xlane.f32.xlu0 %v1532_v24 }
 0x262   : > { %v2650_v25 = vpop.eup %2649 }
 0x263   : > { %v1535_v26 = vsel %vm1323_vm2, %v2650_v25, 0.0 }
 0x264   : > { %1536 = vadd.xlane.f32.xlu1 %v1535_v26 }
 0x266   : > { %v2652_v27 = vpop.eup %2651 }
 0x267   : > { %v1538_v28 = vsel %vm1323_vm2, %v2652_v27, 0.0 }
 0x268   : > { %1539 = vadd.xlane.f32.xlu0 %v1538_v28 }
 0x26a   : > { %v2654_v29 = vpop.eup %2653 }
 0x26b   : > { %v1541_v30 = vsel %vm1323_vm2, %v2654_v29, 0.0 }
 0x26c   : > { %1542 = vadd.xlane.f32.xlu1 %v1541_v30 }
 0x2e9   : > { %v1534_v31 = vpop.xlane.xlu0 %1533 }
 0x2ea   : > { %2655 = vrcp.f32 %v1534_v31 }
 0x2ed   : > { %v1537_v32 = vpop.xlane.xlu1 %1536 }
 0x2ee   : > { %2657 = vrcp.f32 %v1537_v32 }
 0x2f1   : > { %v1540_v34 = vpop.xlane.xlu0 %1539 }
 0x2f2   : > { %2659 = vrcp.f32 %v1540_v34 }
 0x2f5   : > { %v1543_v37 = vpop.xlane.xlu1 %1542 }
 0x2f6   : > { %2661 = vrcp.f32 %v1543_v37 }
 0x2f7   : > { %v2656_v38 = vpop.eup %2655 }
 0x2f8   : > { %v1545_v41 = vmul.f32 %v2656_v38, %v2648_v23 }
 0x2fa   : > { %v1552_v42 = vpack.c.bf16 %v1545_v41, %v1545_v41 }
 0x2fb   : > { %v2658_v44 = vpop.eup %2657 }
 0x2fc   : > { %2511 = vmatmul.mubr.msk.bf16.vlgmr.msra.gmra.mxu0 %vm1323_vm2, %v1552_v42  ;;  %v1547_v47 = vmul.f32 %v2658_v44, %v2650_v25 }
 0x2fd   : > { %2521 = vmatpush3.bf16.msra.mxu0 %v1653_v45  ;;  %2522 = vmatprep.mubr.msk.bf16.mxu0 %vm2730_vm0, %v2729_v1 }
 0x2fe   : > { %v1553_v43 = vpack.c.bf16 %v1547_v47, %v1547_v47  ;;  %2532 = vmatprep.subr.bf16.mxu0 %v2729_v1 }
 0x2ff   : > { %v2660_v49 = vpop.eup %2659 }
 0x300   : > { %2517 = vmatmul.mubr.msk.bf16.vlgmr.msra.gmra.mxu1 %vm1323_vm2, %v1553_v43  ;;  %v1549_v51 = vmul.f32 %v2660_v49, %v2652_v27 }
 0x301   : > { %2527 = vmatpush3.bf16.msra.mxu1 %v1699_v50  ;;  %2528 = vmatprep.mubr.msk.bf16.mxu1 %vm2730_vm0, %v2729_v1 }
 0x302   : > { %v1554_v52 = vpack.c.bf16 %v1549_v51, %v1549_v51  ;;  %2538 = vmatprep.subr.bf16.mxu1 %v2729_v1 }
 0x303   : > { %v2662_v54 = vpop.eup %2661 }
 0x304   : > { %2523 = vmatmul.mubr.msk.bf16.vlgmr.msra.gmra.mxu0 %vm1323_vm2, %v1554_v52  ;;  %v1551_v55 = vmul.f32 %v2662_v54, %v2654_v29  ;;  %v2642_v54 = vld [vmem:[%s3252_s11] sm:$0xff]  }
 0x305   : > { %2533 = vmatpush3.bf16.msra.mxu0 %v1753_v53  ;;  %2534 = vmatprep.mubr.msk.bf16.mxu0 %vm2730_vm0, %v2729_v1  ;;  %v2641_v53 = vld [vmem:[%s3252_s11 + $0x8] sm:$0xff]  }
 0x306   : > { %v1555_v56 = vpack.c.bf16 %v1551_v55, %v1551_v55  ;;  %2544 = vmatprep.subr.bf16.mxu0 %v2729_v1  ;;  %v2644_v55 = vld [vmem:[%s3254_s13 + $0x10] sm:$0xff]  }
 0x308   : > { %2529 = vmatmul.mubr.msk.bf16.vlgmr.msra.gmra.mxu1 %vm1323_vm2, %v1555_v56 }
 0x309   : > { %2540 = vmatprep.mubr.msk.bf16.mxu1 %vm2730_vm0, %v2729_v1  ;;  %2539 = vmatpush3.bf16.msra.mxu1 %v1799_v58 }
 0x30a   : > { %2550 = vmatprep.subr.bf16.mxu1 %v2729_v1 }
 0x3bc   : > { %v1597_v60 = vpop.f32.mrf.mxu0 }
 0x3bd   : > { %v1741_v61 = vpack.c.bf16 %v1597_v60, %v1597_v60  ;;  %v2302_v60 = vld [vmem:[%s3250_s9] ss:$0 sm:$0xff] }
 0x3be   : > { %v2512_v63 = vpop.f32.mrf.mxu0 }
 0x3bf   : > { %2535 = vmatmul.mubr.msk.bf16.vlgmr.msra.gmra.mxu0 %vm1323_vm2, %v1741_v61 }
 0x3c0   : > { %v1600_v2 = vpop.f32.mrf.mxu0  ;;  %v1643_v3 = vpop.f32.mrf.mxu1  ;;  %2545 = vmatpush3.bf16.msra.mxu0 %v1845_v62  ;;  %2546 = vmatprep.mubr.msk.bf16.mxu0 %vm2730_vm0, %v2729_v1  ;;  %v2303_v62 = vld [vmem:[%s3251_s10] ss:$0 sm:$0xff] }
 0x3c1   : > { %v1742_v4 = vpack.c.bf16 %v1643_v3, %v1643_v3  ;;  %2556 = vmatprep.subr.bf16.mxu0 %v2729_v1  ;;  %v2645_v3 = vld [vmem:[%s3254_s13 + $0x8] sm:$0xff]  }
 0x3c2   : > { %v2513_v6 = vpop.f32.mrf.mxu0  ;;  %v2518_v8 = vpop.f32.mrf.mxu1 }
 0x3c3   : > { %2541 = vmatmul.mubr.msk.bf16.vlgmr.msra.gmra.mxu1 %vm1323_vm2, %v1742_v4  ;;  %v2646_v4 = vld [vmem:[%s3254_s13] sm:$0xff]  }
 0x3c4   : > { %v1646_v9 = vpop.f32.mrf.mxu1  ;;  %v1689_v10 = vpop.f32.mrf.mxu0  ;;  %2551 = vmatpush3.bf16.msra.mxu1 %v1891_v5  ;;  %2552 = vmatprep.mubr.msk.bf16.mxu1 %vm2730_vm0, %v2729_v1  ;;  %v2304_v5 = vld [vmem:[%s3253_s12] ss:$0 sm:$0xff] }
 0x3c5   : > { %v1743_v11 = vpack.c.bf16 %v1689_v10, %v1689_v10  ;;  %2564 = vmatprep.subr.bf16.mxu1 %v2729_v1 }
 0x3c6   : > { %v2519_v12 = vpop.f32.mrf.mxu1  ;;  %v2524_v13 = vpop.f32.mrf.mxu0 }
 0x3c7   : > { %2547 = vmatmul.mubr.msk.bf16.vlgmr.msra.gmra.mxu0 %vm1323_vm2, %v1743_v11 }
 0x3c8   : > { %v1692_v14 = vpop.f32.mrf.mxu0  ;;  %v1735_v15 = vpop.f32.mrf.mxu1  ;;  %2560 = vmatprep.mubr.msk.bf16.mxu0 %vm2730_vm0, %v2729_v1  ;;  %2557 = vmatpush3.bf16.msra.mxu0 %v2641_v53 }
 0x3c9   : > { %v1744_v16 = vpack.c.bf16 %v1735_v15, %v1735_v15  ;;  %2558 = vmatprep.subr.bf16.mxu0 %v2729_v1 }
 0x3ca   : > { %v2525_v17 = vpop.f32.mrf.mxu0  ;;  %v2530_v18 = vpop.f32.mrf.mxu1 }
 0x3cb   : > { %2553 = vmatmul.mubr.msk.bf16.vlgmr.msra.gmra.mxu1 %vm1323_vm2, %v1744_v16 }
 0x3cc   : > { %v1738_v19 = vpop.f32.mrf.mxu1  ;;  %2572 = vmatprep.mubr.msk.bf16.mxu1 %vm2730_vm0, %v2729_v1  ;;  %2559 = vmatpush3.bf16.msra.mxu0 %v2642_v54 }
 0x3ce   : > { %v2531_v20 = vpop.f32.mrf.mxu1 }
 0x47f   : > { %v1789_v21 = vpop.f32.mrf.mxu0 }
 0x480   : > { %v1933_v30 = vsel %vm603_vm1, %v1789_v21, 0.0 }
 0x481   : > { %v2536_v22 = vpop.f32.mrf.mxu0 }
 0x483   : > { %v1792_v23 = vpop.f32.mrf.mxu0  ;;  %v1835_v24 = vpop.f32.mrf.mxu1 }
 0x484   : > { %v1934_v27 = vsel %vm603_vm1, %v1835_v24, 0.0 }
 0x485   : > { %v2537_v25 = vpop.f32.mrf.mxu0  ;;  %v2542_v26 = vpop.f32.mrf.mxu1  ;;  %v1935_v32 = vadd.f32 %v1934_v27, %v1933_v30  ;;  %v2314_v30 = vld [vmem:[%s3256_s15] ss:$0 sm:$0xff] }
 0x487   : > { %v1838_v28 = vpop.f32.mrf.mxu1  ;;  %v1881_v29 = vpop.f32.mrf.mxu0 }
 0x488   : > { %v1936_v31 = vsel %vm603_vm1, %v1881_v29, 0.0 }
 0x489   : > { %v2543_v33 = vpop.f32.mrf.mxu1  ;;  %v2548_v34 = vpop.f32.mrf.mxu0  ;;  %v1937_v35 = vadd.f32 %v1936_v31, %v1935_v32  ;;  %v2315_v32 = vld [vmem:[%s3257_s16] ss:$0 sm:$0xff] }
 0x48b   : > { %v1884_v36 = vpop.f32.mrf.mxu0  ;;  %v1927_v37 = vpop.f32.mrf.mxu1 }
 0x48c   : > { %v1938_v38 = vsel %vm603_vm1, %v1927_v37, 0.0 }
 0x48d   : > { %v1939_v40 = vadd.f32 %v1938_v38, %v1937_v35  ;;  %v2549_v41 = vpop.f32.mrf.mxu0  ;;  %v2554_v42 = vpop.f32.mrf.mxu1 }
 0x48f   : > { %v1947_v44 = vadd.f32 %v2301_v39, %v1939_v40  ;;  %v1930_v45 = vpop.f32.mrf.mxu1 }
 0x491   : > { %v2555_v46 = vpop.f32.mrf.mxu1  ;;  %v1948_v47 = vadd.f32 %v1947_v44, %v2902_v7  ;;  %v2643_v7 = vld [vmem:[%s3254_s13 + $0x18] sm:$0xff]  }
 0x492   : > { %2565 = vmatpush3.bf16.msra.mxu1 %v2643_v7 }
 0x493   : > { %v1951_v43 = vsel %vm603_vm1, %v1948_v47, 0.0  ;;  %2566 = vmatprep.subr.bf16.mxu1 %v2729_v1 }
 0x494   : > { %1952 = vadd.xlane.f32.xlu0 %v1951_v43 }
 0x496   : > { %2567 = vmatpush3.bf16.msra.mxu1 %v2644_v55 }
 0x497   : > { %2568 = vmatprep.subr.bf16.mxu1 %v2729_v1 }
 0x49a   : > { %2569 = vmatpush3.bf16.msra.mxu1 %v2645_v3 }
 0x49b   : > { %2570 = vmatprep.subr.bf16.mxu1 %v2729_v1  ;;  %v2308_v1 = vld [vmem:[%s3255_s14] ss:$0 sm:$0xff] }
 0x49e   : > { %2571 = vmatpush3.bf16.msra.mxu1 %v2646_v4 }
 0x51d   : > { %v1953_v49 = vpop.xlane.xlu0 %1952 }
 0x51e   : > { %v1955_v48 = vmul.f32 0.03125, %v1953_v49 }
 0x520   : > { %v1956_v50 = vsub.f32 %v1948_v47, %v1955_v48 }
 0x522   : > { %v1957_v51 = vmul.f32 %v1956_v50, %v1956_v50 }
 0x524   : > { %v1958_v52 = vsel %vm603_vm1, %v1957_v51, 0.0 }
 0x525   : > { %1959 = vadd.xlane.f32.xlu1 %v1958_v52 }
 0x5ae   : > { %v1960_v56 = vpop.xlane.xlu1 %1959 }
 0x5af   : > { %v1961_v57 = vmul.f32 0.03125, %v1960_v56 }
 0x5b1   : > { %v1962_v58 = vadd.f32 1e-05, %v1961_v57 }
 0x5b3   : > { %2663 = vrsqrt.f32 %v1962_v58 }
 0x5c0   : > { %v2664_v59 = vpop.eup %2663 }
 0x5c1   : > { %v1964_v61 = vmul.f32 %v2664_v59, %v1956_v50 }
 0x5c3   : > { %v1971_v63 = vmul.f32 %v2302_v60, %v1964_v61 }
 0x5c5   : > { %v1978_v0 = vadd.f32 %v2303_v62, %v1971_v63 }
 0x5c7   : > { %v1979_v2 = vpack.c.bf16 %v1978_v0, %v1978_v0 }
 0x5c9   : > { %2561 = vmatmul.mubr.msk.bf16.vlgmr.msra.gmra.mxu0 %vm603_vm1, %v1979_v2 }
 0x689   : > { %v2040_v6 = vpop.f32.mrf.mxu0 }
 0x68a   : > { %v2041_v8 = vadd.f32 %v2304_v5, %v2040_v6 }
 0x68b   : > { %v2562_v9 = vpop.f32.mrf.mxu0 }
 0x68c   : > { %v2046_v10 = vmax.f32 %v2041_v8, 0.0 }
 0x68d   : > { %v2043_v11 = vpop.f32.mrf.mxu0 }
 0x68e   : > { %v2047_v12 = vpack.c.bf16 %v2046_v10, %v2046_v10 }
 0x68f   : > { %v2563_v13 = vpop.f32.mrf.mxu0 }
 0x690   : > { %2573 = vmatmul.mubr.msk.bf16.vlgmr.msra.gmra.mxu1 %vm2087_vm4, %v2047_v12 }
 0x750   : > { %v2125_v14 = vpop.f32.mrf.mxu1 }
 0x751   : > { %v2126_v15 = vadd.f32 %v2308_v1, %v2125_v14 }
 0x752   : > { %v2574_v16 = vpop.f32.mrf.mxu1 }
 0x753   : > { %v2131_v17 = vadd.f32 %v2126_v15, %v1978_v0 }
 0x754   : > { %v2128_v18 = vpop.f32.mrf.mxu1 }
 0x755   : > { %v2134_v19 = vsel %vm603_vm1, %v2131_v17, 0.0 }
 0x756   : > { %2135 = vadd.xlane.f32.xlu0 %v2134_v19  ;;  %v2575_v20 = vpop.f32.mrf.mxu1 }
 0x7df   : > { %v2136_v21 = vpop.xlane.xlu0 %2135 }
 0x7e0   : > { %v2137_v22 = vmul.f32 0.03125, %v2136_v21 }
 0x7e2   : > { %v2138_v23 = vsub.f32 %v2131_v17, %v2137_v22 }
 0x7e4   : > { %v2139_v24 = vmul.f32 %v2138_v23, %v2138_v23 }
 0x7e6   : > { %v2140_v25 = vsel %vm603_vm1, %v2139_v24, 0.0 }
 0x7e7   : > { %2141 = vadd.xlane.f32.xlu1 %v2140_v25 }
 0x870   : > { %v2142_v26 = vpop.xlane.xlu1 %2141 }
 0x871   : > { %v2143_v27 = vmul.f32 0.03125, %v2142_v26 }
 0x873   : > { %v2144_v28 = vadd.f32 1e-05, %v2143_v27 }
 0x875   : > { %2665 = vrsqrt.f32 %v2144_v28 }
 0x882   : > { %v2666_v29 = vpop.eup %2665 }
 0x883   : > { %v2146_v31 = vmul.f32 %v2666_v29, %v2138_v23 }
 0x885   : > { %v2153_v33 = vmul.f32 %v2314_v30, %v2146_v31 }
 0x887   : > { %v2160_v34 = vadd.f32 %v2315_v32, %v2153_v33 }
 0x889   : > { %2161 = vst.msk [vmem:[%s539_s18] sm:$0xff] %vm603_vm1, %v2160_v34 }
 0x88a   : > { %2680 = shalt.err (!%p2677_p3)
}
 0x88b   : > { %s2681_s2 = scalar_lea.hbm %s2174_s3, 128  ;;  %s2685_s19 = scalar_lea.hbm %s3258_s17, 256 }
 0x88c   : > { %p2682_p4 = scmp.ne.s32.totalorder %s2174_s3, %s2681_s2  ;;  %p2686_p9 = scmp.lt.s32.totalorder %s2174_s3, %s3258_s17 }
 0x88d   : > { %p2687_p10 = scmp.lt.s32.totalorder %s2685_s19, %s2681_s2 }
 0x88e   : > { %p2683_p7 = pnand %p2682_p4, %p2860_p5 }
 0x88f   : > { %p2688_p11 = por %p2687_p10, %p2686_p9 }
 0x890   : > { %p2684_p8 = pneg %p2683_p7 }
 0x892   : > { %p2689_p12 = pnand %p2688_p11, %p2684_p8 }
 0x894   : > { %2692 = shalt.err (!%p2689_p12)
}
 0x895   : > { %2576 = dma.vmem_to_hbm [thread:$0]  (%p2860_p5), %s2177_s21, 128, %s2174_s3, %s2163_s4  }
 0x896 PF: > { %s3282_s22 = sld [smem:[#allocation5_spill]]  ;;  %p2582_p13 = scmp.ge.s32.totalorder %s2727_s27, 2 }
 0x898   : > { %p2579_p0 = pnand %p2582_p13, %p2864_p6 }
 0x89a   : > { %p2580_p1 = pneg %p2579_p0 }
 0x89c   : > { %s2188_s20 = sand.u32 1, %s3282_s22  }
 0x89d   : > { %s2189_s29 = scalar_lea.sflag [#allocation3], %s2188_s20 }
 0x89e   : > { %2710 = dma.done.wait (%p2580_p1), %s2189_s29, 128  }
 0x89f   : > { %2712 = vsyncadd (%p2580_p1), %s2189_s29, 4294967168  ;;  %s3284_s27 = sld [smem:[#allocation7_spill]]  ;;  %s3287_s24 = smov %s2719_s25 }
 0x8a0   : > { %s3285_s28 = sld [smem:[#allocation6_spill]] }
 0x8a1   : > { %s3286_s26 = sld [smem:[#allocation8_spill]] }
 0x8a5   : > { %p27_p2 = scmp.ge.s32.totalorder %s3284_s27, 4  }
 0x8a6   : > { %s3288_s25 = smov %s3285_s28 }
 0x8a7   :  { %29 = sbr.rel (!%p27_p2) target bundleno = 9 (0x9), region = 123 }
 0x8ac   :  { %2194 = vsyncpa [#allocation3], 1 }
 0x8ad   :  { %2196 = vsyncpa [#allocation3 + $0x1], 1 }

</bundles_post_ra>
